<compile_context>
chip_gen: v5e
topology: v5e:2x2
jax: 0.10.0
libtpu: 0.0.40
codegen_flags: <defaults>
</compile_context>

<pallas_src>
import functools

import jax
import jax.numpy as jnp
from jax.experimental import pallas as pl
from jax.experimental.pallas import tpu as pltpu

_MAX_ROW_TILE = 1024
_MIN_ROWS_FOR_MULTI_STEP = 32
_TARGET_GRID_STEPS = 4          # >= 2 grid steps per TensorCore on v7x megacore


def _vmem_budgets():
    """Return (tile_budget_bytes, vmem_limit_bytes) for the local TPU generation."""
    cap = None
    try:
        info = pltpu.get_tpu_info()
        cap = getattr(info, "vmem_capacity_bytes", None)
    except Exception:
        cap = None
    if cap is None or cap <= 64 * 1024 * 1024:
        # v7x (or unknown): 64 MiB physical per TensorCore — leave headroom for
        # Mosaic internal scratch, semaphores and the pipeline's own buffers.
        return 24 * 1024 * 1024, 40 * 1024 * 1024
    # v5e / v6e: 128 MiB physical VMEM.
    return 48 * 1024 * 1024, 64 * 1024 * 1024


def _pick_row_tile(rows, features, itemsize, tile_budget):
    """Largest row tile (multiple of 8) that fits the VMEM budget, capped so the
    grid keeps >= ~4 steps whenever there are enough rows."""
    # Per-row bytes resident in VMEM while one block is in flight:
    #   2 (double buffer) * 2 (in + out) tiles in the native dtype
    # + ~3 full-tile f32 temporaries (x upcast, diff, pre-cast out) = 12 B/elem.
    per_row_bytes = features * (2 * 2 * itemsize + 12)
    max_rows = max(8, tile_budget // max(per_row_bytes, 1))
    row_tile = max(8, min(_MAX_ROW_TILE, (max_rows // 8) * 8))

    if rows >= _MIN_ROWS_FOR_MULTI_STEP:
        # Cap at ~rows/4 so there are >= ~4 grid steps: prefetch(i+1) and
        # writeback(i-1) then overlap compute(i) on every generation, and v7x
        # gets >= 2 steps per core. For rows >= 1024 this is automatically
        # >= 256 rows per block, keeping each DMA large.
        per_step = -(-rows // _TARGET_GRID_STEPS)        # ceil
        per_step = max(8, ((per_step + 7) // 8) * 8)     # round up to 8
        row_tile = min(row_tile, per_step)
    return row_tile


def _layernorm_kernel(x_ref, gamma_ref, beta_ref, o_ref, *, eps, features):
    x = x_ref[...].astype(jnp.float32)            # (row_tile, features)
    gamma = gamma_ref[...].astype(jnp.float32)    # (1, features)
    beta = beta_ref[...].astype(jnp.float32)      # (1, features)

    mean = jnp.mean(x, axis=-1, keepdims=True)
    diff = x - mean
    # torch.std default is unbiased -> divide by (N - 1).
    var = jnp.sum(diff * diff, axis=-1, keepdims=True) / (features - 1)
    std = jnp.sqrt(var)
    # Per-row reciprocal of (std + eps); broadcasted multiplies ride the VPU
    # (which has slack in a mem-bound kernel). approx=False keeps 1e-5 accuracy.
    inv = pl.reciprocal(std + eps, approx=False)
    o_ref[...] = ((diff * inv) * gamma + beta).astype(o_ref.dtype)


def layer_norm(x, a_2, b_2, eps=1e-6, row_tile=None):
    """x: [..., features]; a_2, b_2: [features].

    Fast path expects features % 128 == 0 (lane-dense, unmasked stores); other
    feature sizes are still correct but use masked partial-lane stores.
    """
    features = x.shape[-1]
    assert features >= 2, "unbiased std requires at least 2 features"
    rows = 1
    for d in x.shape[:-1]:
        rows *= d

    x2d = x.reshape(rows, features)
    gamma2d = a_2.reshape(1, features)
    beta2d = b_2.reshape(1, features)

    tile_budget, vmem_limit = _vmem_budgets()
    if row_tile is None:
        row_tile = _pick_row_tile(rows, features, x.dtype.itemsize, tile_budget)

    # No wrapper-side padding: Pallas masks the partial tail block's writes and
    # each row's math is independent, so padded garbage rows never leak.
    grid = (pl.cdiv(rows, row_tile),)

    out2d = pl.pallas_call(
        functools.partial(_layernorm_kernel, eps=eps, features=features),
        out_shape=jax.ShapeDtypeStruct((rows, features), x.dtype),
        grid_spec=pltpu.PrefetchScalarGridSpec(
            num_scalar_prefetch=0,
            grid=grid,
            in_specs=[
                # NOTE: a 3-deep pipeline (pipeline_mode=pl.Buffered(3)) on this
                # input is a possible few-% win on v7x; left at the default 2 to
                # keep VMEM headroom across generations.
                pl.BlockSpec((row_tile, features), lambda i: (i, 0)),
                pl.BlockSpec((1, features), lambda i: (0, 0)),
                pl.BlockSpec((1, features), lambda i: (0, 0)),
            ],
            out_specs=pl.BlockSpec((row_tile, features), lambda i: (i, 0)),
        ),
        compiler_params=pltpu.CompilerParams(
            dimension_semantics=("parallel",),
            vmem_limit_bytes=vmem_limit,
        ),
    )(x2d, gamma2d, beta2d)

    return out2d.reshape(x.shape)


def residual_skip_connection_with_layer_norm(x, sublayer, a_2, b_2, eps=1e-6,
                                             dropout_rate=0.0):
    """x + dropout(sublayer(LayerNorm(x))) — eval-mode forward.

    `sublayer` is an arbitrary JAX callable (applied outside the kernel, as in
    the PyTorch module where it is a user-supplied nn.Module). The residual add
    is left to XLA so it can fuse with the sublayer's output epilogue under jit.
    """
    normed = layer_norm(x, a_2, b_2, eps=eps)
    y = sublayer(normed)
    # TODO(synk): training-mode dropout (random inverted-mask scaling) is not
    # implemented; nn.Dropout in eval mode is the identity, which is what we do.
    del dropout_rate
    return x + y


def _reference(x, sublayer, a_2, b_2, eps):
    features = x.shape[-1]
    mean = jnp.mean(x, axis=-1, keepdims=True)
    std = jnp.sqrt(jnp.sum((x - mean) ** 2, axis=-1, keepdims=True) / (features - 1))
    normed = a_2 * (x - mean) / (std + eps) + b_2
    return x + sublayer(normed)


if __name__ == "__main__":
    key = jax.random.PRNGKey(0)
    eps = 1e-6
    sublayer = lambda h: h   # identity sublayer for the demo

    # ---- Test 1: lane-dense hidden (fast path), jitted residual wrapper ----
    batch, seq, hidden = 2, 8, 128
    k1, k2 = jax.random.split(key)
    x = jax.random.normal(k1, (batch, seq, hidden), dtype=jnp.float32)
    a_2 = jnp.ones((hidden,), dtype=jnp.float32)
    b_2 = jnp.zeros((hidden,), dtype=jnp.float32)

    fwd = jax.jit(lambda xx: residual_skip_connection_with_layer_norm(
        xx, sublayer, a_2, b_2, eps=eps))
    out = jax.block_until_ready(fwd(x))
    ref = _reference(x, sublayer, a_2, b_2, eps)
    assert jnp.allclose(out, ref, atol=1e-5, rtol=1e-5), "mismatch (test 1)"

    # ---- Test 2: partial tail block (rows % row_tile != 0) ----
    x2 = jax.random.normal(k2, (3, 7, hidden), dtype=jnp.float32)   # 21 rows
    out2 = layer_norm(x2, a_2, b_2, eps=eps, row_tile=8)            # grid = 3, last block partial
    out2 = jax.block_until_ready(x2 + sublayer(out2))
    ref2 = _reference(x2, sublayer, a_2, b_2, eps)
    assert jnp.allclose(out2, ref2, atol=1e-5, rtol=1e-5), "mismatch (test 2, partial tail)"

    print("KERNEL_OK")
</pallas_src>

<mosaic_0001>
module attributes {stable_mosaic.version = 11 : i64} {
  func.func @_layernorm_kernel(%arg0: i32, %arg1: memref<1024x128xf32, #tpu.memory_space<vmem>>, %arg2: memref<1x128xf32, #tpu.memory_space<vmem>>, %arg3: memref<1x128xf32, #tpu.memory_space<vmem>>, %arg4: memref<1024x128xf32, #tpu.memory_space<vmem>>) attributes {dimension_semantics = [#tpu.dimension_semantics<parallel>], iteration_bounds = array<i64: 1>, scalar_prefetch = 0 : i64, scratch_operands = 0 : i64, tpu.core_type = #tpu.core_type<tc>, window_params = [{transform_indices = @transform_0, window_bounds = array<i64: 1024, 128>}, {pipeline_mode = #tpu.pipeline_mode<synchronous>, transform_indices = @transform_1, window_bounds = array<i64: 1, 128>}, {pipeline_mode = #tpu.pipeline_mode<synchronous>, transform_indices = @transform_2, window_bounds = array<i64: 1, 128>}, {transform_indices = @transform_3, window_bounds = array<i64: 1024, 128>}]} {
    %c0 = arith.constant 0 : index
    %c0_0 = arith.constant 0 : index
    %0 = vector.load %arg1[%c0, %c0_0] : memref<1024x128xf32, #tpu.memory_space<vmem>>, vector<1024x128xf32>
    %c0_1 = arith.constant 0 : index
    %c0_2 = arith.constant 0 : index
    %1 = vector.load %arg2[%c0_1, %c0_2] : memref<1x128xf32, #tpu.memory_space<vmem>>, vector<1x128xf32>
    %c0_3 = arith.constant 0 : index
    %c0_4 = arith.constant 0 : index
    %2 = vector.load %arg3[%c0_3, %c0_4] : memref<1x128xf32, #tpu.memory_space<vmem>>, vector<1x128xf32>
    %cst = arith.constant dense<0.000000e+00> : vector<1024xf32>
    %3 = vector.multi_reduction <add>, %0, %cst [1] : vector<1024x128xf32> to vector<1024xf32>
    %4 = vector.shape_cast %3 : vector<1024xf32> to vector<1024x1xf32>
    %cst_5 = arith.constant 1.280000e+02 : f32
    %5 = vector.broadcast %cst_5 : f32 to vector<1024x1xf32>
    %6 = arith.divf %4, %5 : vector<1024x1xf32>
    %7 = vector.broadcast %6 : vector<1024x1xf32> to vector<1024x128xf32>
    %8 = arith.subf %0, %7 : vector<1024x128xf32>
    %9 = arith.mulf %8, %8 : vector<1024x128xf32>
    %cst_6 = arith.constant dense<0.000000e+00> : vector<1024xf32>
    %10 = vector.multi_reduction <add>, %9, %cst_6 [1] : vector<1024x128xf32> to vector<1024xf32>
    %11 = vector.shape_cast %10 : vector<1024xf32> to vector<1024x1xf32>
    %cst_7 = arith.constant 1.270000e+02 : f32
    %12 = vector.broadcast %cst_7 : f32 to vector<1024x1xf32>
    %13 = arith.divf %11, %12 : vector<1024x1xf32>
    %14 = math.sqrt %13 : vector<1024x1xf32>
    %cst_8 = arith.constant 9.99999997E-7 : f32
    %15 = vector.broadcast %cst_8 : f32 to vector<1024x1xf32>
    %16 = arith.addf %14, %15 : vector<1024x1xf32>
    %17 = tpu.reciprocal %16 : vector<1024x1xf32> -> vector<1024x1xf32>
    %18 = vector.broadcast %17 : vector<1024x1xf32> to vector<1024x128xf32>
    %19 = arith.mulf %8, %18 : vector<1024x128xf32>
    %20 = vector.broadcast %1 : vector<1x128xf32> to vector<1024x128xf32>
    %21 = arith.mulf %19, %20 : vector<1024x128xf32>
    %22 = vector.broadcast %2 : vector<1x128xf32> to vector<1024x128xf32>
    %23 = arith.addf %21, %22 : vector<1024x128xf32>
    %c0_9 = arith.constant 0 : index
    %c0_10 = arith.constant 0 : index
    %24 = vector.load %arg4[%c0_9, %c0_10] : memref<1024x128xf32, #tpu.memory_space<vmem>>, vector<1024x128xf32>
    tpu.vector_store %arg4[%c0_9, %c0_10], %23 {strides = array<i32>} : memref<1024x128xf32, #tpu.memory_space<vmem>>, vector<1024x128xf32>,
    return
  }
  func.func @transform_0(%arg0: i32) -> (i32, i32) {
    %c0_i32 = arith.constant 0 : i32
    %c0_i32_0 = arith.constant 0 : i32
    return %arg0, %c0_i32 : i32, i32
  }
  func.func @transform_1(%arg0: i32) -> (i32, i32) {
    %c0_i32 = arith.constant 0 : i32
    %c0_i32_0 = arith.constant 0 : i32
    %c0_i32_1 = arith.constant 0 : i32
    return %c0_i32, %c0_i32_0 : i32, i32
  }
  func.func @transform_2(%arg0: i32) -> (i32, i32) {
    %c0_i32 = arith.constant 0 : i32
    %c0_i32_0 = arith.constant 0 : i32
    %c0_i32_1 = arith.constant 0 : i32
    return %c0_i32, %c0_i32_0 : i32, i32
  }
  func.func @transform_3(%arg0: i32) -> (i32, i32) {
    %c0_i32 = arith.constant 0 : i32
    %c0_i32_0 = arith.constant 0 : i32
    return %arg0, %c0_i32 : i32, i32
  }
}

</mosaic_0001>

<bundles_post_ra>
// kernel: _lambda_.1
= control target key start
LH: loop header
LB: loop body
LE: loop exit
PB: predicated region body
PF: predicated region fallthrough
CT: control target
= control target key end

     0   :  { %8 = vsyncpa [#allocation3], 0  ;;  %s5313_s0 = inlined_call_operand.hbm [shape: f32[16,128], index: 0, kind: input, shape index: {}]   ;;  %s5314_s1 = inlined_call_operand.vmem [shape: f32[1,128], index: 1, kind: input, shape index: {}]   ;;  %s5315_s2 = inlined_call_operand.vmem [shape: f32[1,128], index: 2, kind: input, shape index: {}]   ;;  %s5316_s3 = inlined_call_operand.vmem [shape: f32[16,128], index: 3, kind: output, shape index: {}]  }
   0x1   :  { %12 = vsyncadd [#allocation3], 16128  ;;  %s13_s14 = sshll.u32 %s5313_s0, 4  ;;  %s5263_s15 = smov [#allocation2]   ;;  %s14_s14 = int_to_ptr.hbm [resolvable:$true] %s13_s14 }
   0x2   :  { %s15_s16 = sshll.u32 %s5263_s15, 4  ;;  %s5264_s17 = smov 128   ;;  %s16_s16 = int_to_ptr.vmem [resolvable:$true] %s15_s16 }
   0x3   :  { %s5265_s18 = smov 8  }
   0x4   :  { %21 = dma.hbm_to_vmem [thread:$0]  %s14_s14, 256, %s16_s16, [#allocation3], %s5264_s17, %s5264_s17, %s5265_s18  }
   0x5   :  { %5261 = dma.done.wait [#allocation3], 16384  }
   0x6   :  { %5262 = vsyncadd [#allocation3], 4294950912  ;;  %v30_v0 = vld [vmem:[#allocation2] sm:$0xff]  ;;  %v31_v1 = vld [vmem:[#allocation2 + $0x8] sm:$0xff]  ;;  %v5266_v2 = vmov 128.0   ;;  %v5267_v17 = vmov 127.0  }
   0x7   :  { %160 = vadd.xlane.f32.xlu0 %v30_v0  ;;  %5225 = vrcp.f32 %v5266_v2  ;;  %v5223_v59 = vld [vmem:[%s5314_s1] ss:$0 sm:$0xff] }
   0x8   :  { %5227 = vrcp.f32 %v5267_v17  ;;  %v5224_v63 = vld [vmem:[%s5315_s2] ss:$0 sm:$0xff] }
   0xd   :  { %v5226_v3 = vpop.eup %5225 }
   0xe   :  { %v417_v4 = vmul.f32 128.0, %v5226_v3  ;;  %vm421_vm0 = vweird.f32 %v5226_v3  ;;  %v5228_v18 = vpop.eup %5227 }
   0xf   :  { %162 = vadd.xlane.f32.xlu0 %v31_v1  ;;  %v1064_v19 = vmul.f32 127.0, %v5228_v18  ;;  %vm1068_vm1 = vweird.f32 %v5228_v18 }
  0x10   :  { %v418_v5 = vsub.f32 1.0, %v417_v4 }
  0x11   :  { %v1065_v20 = vsub.f32 1.0, %v1064_v19 }
  0x12   :  { %v419_v6 = vmul.f32 %v5226_v3, %v418_v5 }
  0x13   :  { %v1066_v21 = vmul.f32 %v5228_v18, %v1065_v20 }
  0x14   :  { %v420_v7 = vadd.f32 %v5226_v3, %v419_v6 }
  0x15   :  { %v1067_v22 = vadd.f32 %v5228_v18, %v1066_v21 }
  0x16   :  { %v422_v8 = vsel %vm421_vm0, %v5226_v3, %v420_v7 }
  0x17   :  { %v1069_v23 = vsel %vm1068_vm1, %v5228_v18, %v1067_v22 }
  0x7a   :  { %v161_v9 = vpop.xlane.xlu0 %160 }
  0x7b   :  { %v423_v10 = vmul.f32 %v422_v8, %v161_v9 }
  0x7d   :  { %v5291_v11 = vsub.f32 %v30_v0, %v423_v10 }
  0x7f   :  { %v679_v12 = vmul.f32 %v5291_v11, %v5291_v11 }
  0x81   :  { %807 = vadd.xlane.f32.xlu1 %v679_v12 }
  0x82   :  { %v163_v13 = vpop.xlane.xlu0 %162 }
  0x83   :  { %v424_v14 = vmul.f32 %v422_v8, %v163_v13 }
  0x85   :  { %v5295_v15 = vsub.f32 %v31_v1, %v424_v14 }
  0x87   :  { %v680_v16 = vmul.f32 %v5295_v15, %v5295_v15 }
  0x89   :  { %809 = vadd.xlane.f32.xlu1 %v680_v16 }
  0xf4   :  { %v808_v24 = vpop.xlane.xlu1 %807 }
  0xf5   :  { %v1070_v25 = vmul.f32 %v1069_v23, %v808_v24 }
  0xf7   :  { %5229 = vrsqrt.f32 %v1070_v25  ;;  %vm1205_vm2 = vcmp.eq.f32.partialorder %v1070_v25, inf  ;;  %v1208_v38 = vand.u32 2147483648, %v1070_v25  ;;  %vm1207_vm3 = vcmp.eq.f32.partialorder %v1070_v25, 0.0 }
  0xfc   :  { %v810_v26 = vpop.xlane.xlu1 %809 }
  0xfd   :  { %v5230_v27 = vpop.eup %5229  ;;  %v1071_v28 = vmul.f32 %v1069_v23, %v810_v26 }
  0xfe   :  { %v1199_v29 = vmul.f32 %v5230_v27, %v1070_v25 }
  0xff   :  { %5231 = vrsqrt.f32 %v1071_v28  ;;  %vm1217_vm4 = vcmp.eq.f32.partialorder %v1071_v28, inf  ;;  %v1220_v46 = vand.u32 2147483648, %v1071_v28  ;;  %vm1219_vm5 = vcmp.eq.f32.partialorder %v1071_v28, 0.0 }
 0x100   :  { %v1200_v30 = vmul.f32 %v5230_v27, %v1199_v29 }
 0x102   :  { %v1201_v31 = vmul.f32 0.5, %v1200_v30 }
 0x104   :  { %v1202_v32 = vsub.f32 1.5, %v1201_v31 }
 0x105   :  { %v5232_v33 = vpop.eup %5231 }
 0x106   :  { %v1203_v34 = vmul.f32 %v5230_v27, %v1202_v32  ;;  %v1211_v35 = vmul.f32 %v5232_v33, %v1071_v28 }
 0x108   :  { %v1204_v36 = vmul.f32 %v1203_v34, %v1070_v25  ;;  %v1212_v37 = vmul.f32 %v5232_v33, %v1211_v35 }
 0x10a   :  { %v1206_v39 = vsel %vm1205_vm2, %v1070_v25, %v1204_v36  ;;  %v1213_v40 = vmul.f32 0.5, %v1212_v37 }
 0x10b   :  { %v1209_v41 = vsel %vm1207_vm3, %v1208_v38, %v1206_v39 }
 0x10c   :  { %v2734_v42 = vadd.f32 1e-06, %v1209_v41  ;;  %v1214_v43 = vsub.f32 1.5, %v1213_v40 }
 0x10e   :  { %5233 = vrcp.f32 %v2734_v42  ;;  %v1215_v44 = vmul.f32 %v5232_v33, %v1214_v43  ;;  %v2873_v53 = vand.u32 2147483648, %v2734_v42  ;;  %v2871_v55 = vand.u32 2147483647, %v2734_v42 }
 0x10f   :  { %vm2867_vm7 = vweird.f32 %v2734_v42 }
 0x110   :  { %v1216_v45 = vmul.f32 %v1215_v44, %v1071_v28  ;;  %v2874_v57 = vor.u32 1.1754944e-38, %v2873_v53  ;;  %vm2872_vm9 = vcmp.eq.f32.partialorder %v2871_v55, 8.507059e+37 }
 0x112   :  { %v1218_v47 = vsel %vm1217_vm4, %v1071_v28, %v1216_v45 }
 0x113   :  { %v1221_v49 = vsel %vm1219_vm5, %v1220_v46, %v1218_v47 }
 0x114   :  { %v5234_v48 = vpop.eup %5233  ;;  %v2735_v51 = vadd.f32 1e-06, %v1221_v49 }
 0x115   :  { %v2863_v50 = vmul.f32 %v5234_v48, %v2734_v42  ;;  %vm2868_vm6 = vweird.f32 %v5234_v48 }
 0x116   :  { %5235 = vrcp.f32 %v2735_v51  ;;  %vm2869_vm8 = vmor %vm2867_vm7, %vm2868_vm6  ;;  %v2887_v3 = vand.u32 2147483648, %v2735_v51  ;;  %v2885_v5 = vand.u32 2147483647, %v2735_v51  ;;  %vm2881_vm11 = vweird.f32 %v2735_v51 }
 0x117   :  { %v2864_v52 = vsub.f32 1.0, %v2863_v50 }
 0x118   :  { %v2888_v8 = vor.u32 1.1754944e-38, %v2887_v3  ;;  %vm2886_vm13 = vcmp.eq.f32.partialorder %v2885_v5, 8.507059e+37 }
 0x119   :  { %v2865_v54 = vmul.f32 %v5234_v48, %v2864_v52 }
 0x11b   :  { %v2866_v56 = vadd.f32 %v5234_v48, %v2865_v54 }
 0x11c   :  { %v5236_v58 = vpop.eup %5235 }
 0x11d   :  { %v2870_v60 = vsel %vm2869_vm8, %v5234_v48, %v2866_v56  ;;  %v2877_v62 = vmul.f32 %v5236_v58, %v2735_v51  ;;  %vm2882_vm10 = vweird.f32 %v5236_v58 }
 0x11e   :  { %v2875_v61 = vsel %vm2872_vm9, %v2874_v57, %v2870_v60  ;;  %vm2883_vm12 = vmor %vm2881_vm11, %vm2882_vm10 }
 0x11f   :  { %v4654_v0 = vmul.f32 %v2875_v61, %v5291_v11  ;;  %v2878_v1 = vsub.f32 1.0, %v2877_v62 }
 0x121   :  { %v4785_v2 = vmul.f32 %v5223_v59, %v4654_v0  ;;  %v2879_v4 = vmul.f32 %v5236_v58, %v2878_v1 }
 0x123   :  { %v4916_v6 = vadd.f32 %v5224_v63, %v4785_v2  ;;  %v2880_v7 = vadd.f32 %v5236_v58, %v2879_v4 }
 0x125   :  { %5205 = vst [vmem:[%s5316_s3] sm:$0xff] %v4916_v6  ;;  %v2884_v9 = vsel %vm2883_vm12, %v5236_v58, %v2880_v7 }
 0x126   :  { %v2889_v10 = vsel %vm2886_vm13, %v2888_v8, %v2884_v9 }
 0x127   :  { %v4655_v11 = vmul.f32 %v2889_v10, %v5295_v15 }
 0x129   :  { %v4786_v12 = vmul.f32 %v5223_v59, %v4655_v11 }
 0x12b   :  { %v4917_v13 = vadd.f32 %v5224_v63, %v4786_v12 }
 0x12d   :  { %5207 = vst [vmem:[%s5316_s3 + $0x8] sm:$0xff] %v4917_v13 }
 0x12e   :  { %5213 = vsyncpa [#allocation3], 1 }

</bundles_post_ra>
